<compile_context>
chip_gen: v6e
topology: v6e:2x2x1
jax: 0.10.0
libtpu: 0.0.40
codegen_flags: <defaults>
</compile_context>

<pallas_src>
import jax
import jax.numpy as jnp
from jax.experimental import pallas as pl
from jax.experimental.pallas import tpu as pltpu


def block_change_kernel(x_ref, w1s_ref, t1_ref, w2_ref, t2_ref, o_ref):
    out_f = o_ref.shape[-1]

    # in-kernel cast f32 -> bf16 (avoids a separate XLA cast pass over x)
    x = x_ref[...].astype(w1s_ref.dtype)

    # Fused fc1 + shortcut: one (tile_b, IN) @ (IN, 2*OUT) MXU matmul.
    # BN scales are pre-folded into the weight columns.
    y = jnp.dot(x, w1s_ref[...], preferred_element_type=jnp.float32)

    # fc1 -> bn1 -> relu       (dropout1 = identity at inference)
    h = jnp.maximum(y[:, :out_f] + t1_ref[...], 0.0)
    # shortcut fc -> bn        (its shift is folded into t2; dropout = id)
    sc = y[:, out_f:]

    # fc2 -> bn2 (scale folded into w2, shift+shortcut-shift in t2)
    h2 = jnp.dot(h.astype(w2_ref.dtype), w2_ref[...],
                 preferred_element_type=jnp.float32) + t2_ref[...]

    # residual add + relu2; cast to bf16 only at the store
    o_ref[...] = jnp.maximum(h2 + sc, 0.0).astype(o_ref.dtype)


def block_change_pallas(x, packed, *, tile_b=None, vmem_limit_bytes=None):
    """x: [B, in_features] float32 (kept f32; cast happens in-kernel).
    packed: dict from pack_params() (weights already in bf16)."""
    B, IN = x.shape
    OUT = packed["t2"].shape[-1]
    w1s, t1, w2, t2 = packed["w1s"], packed["t1"], packed["w2"], packed["t2"]

    if tile_b is None:
        # >= ~4 pipeline steps at large B (so each v7x TC gets >= 2 and still
        # overlaps DMA/compute); one big step for small B (v5e/v6e single TC).
        tile_b = 128 if B >= 512 else B
    tb = min(tile_b, B)

    # Pad the batch only when it doesn't divide evenly (demo sizes don't pad).
    Bp = pl.cdiv(B, tb) * tb
    xp = x if Bp == B else jnp.pad(x, ((0, Bp - B), (0, 0)))

    # Rough per-call VMEM budget: double-buffered x/out tiles, single-buffered
    # weights, plus the f32 intermediates (y, h, h2) of the body.
    vmem_est = (2 * tb * IN * 4                      # x tile (f32), 2 bufs
                + 2 * tb * OUT * 2                   # out tile (bf16), 2 bufs
                + w1s.size * 2 + w2.size * 2         # weights (bf16), 1 buf
                + (t1.size + t2.size) * 4            # shifts (f32)
                + tb * (2 * OUT) * 4                 # y
                + 2 * tb * OUT * 4)                  # h, h2
    if vmem_limit_bytes is None and vmem_est > 32 * 1024 * 1024:
        vmem_limit_bytes = min(int(vmem_est * 5 // 4), 128 * 1024 * 1024)
    # TODO(synk): for very large OUT, also shrink tile_b / add a K grid axis
    # with a VMEM f32 accumulator to stay inside v7x's 64 MiB physical VMEM.

    flops = 2 * Bp * (IN * 2 * OUT + OUT * OUT)
    bytes_accessed = (Bp * IN * 4                    # x (f32)
                      + w1s.size * 2 + w2.size * 2   # bf16 weights
                      + (t1.size + t2.size) * 4      # f32 shifts
                      + Bp * OUT * 2)                # bf16 output

    const = pl.Buffered(1)  # weights/shifts never change -> single buffer
    grid_spec = pltpu.PrefetchScalarGridSpec(
        num_scalar_prefetch=0,
        grid=(Bp // tb,),
        in_specs=[
            pl.BlockSpec((tb, IN), lambda i: (i, 0)),                             # x tile (f32)
            pl.BlockSpec((IN, 2 * OUT), lambda i: (0, 0), pipeline_mode=const),   # w1 || ws
            pl.BlockSpec((1, OUT), lambda i: (0, 0), pipeline_mode=const),        # t1
            pl.BlockSpec((OUT, OUT), lambda i: (0, 0), pipeline_mode=const),      # w2
            pl.BlockSpec((1, OUT), lambda i: (0, 0), pipeline_mode=const),        # t2 (+ ts)
        ],
        out_specs=pl.BlockSpec((tb, OUT), lambda i: (i, 0)),
    )

    out = pl.pallas_call(
        block_change_kernel,
        out_shape=jax.ShapeDtypeStruct((Bp, OUT), jnp.bfloat16),
        grid_spec=grid_spec,
        compiler_params=pltpu.CompilerParams(
            dimension_semantics=("parallel",),
            vmem_limit_bytes=vmem_limit_bytes),
        cost_estimate=pl.CostEstimate(
            flops=flops, transcendentals=0, bytes_accessed=bytes_accessed),
    )(xp, w1s, t1, w2, t2)

    return out if Bp == B else out[:B]


def init_params(key, in_features, out_features, eps=1e-5):
    """Deterministic params mimicking nn.Linear / nn.BatchNorm1d (eval),
    with BN running stats + bias folded into (scale, shift)."""
    def linear(key, fan_in, fan_out):
        kw, kb = jax.random.split(key)
        bound = 1.0 / jnp.sqrt(fan_in)
        # PyTorch weight is [out, in]; store transposed [in, out] for the kernel.
        w = jax.random.uniform(kw, (fan_in, fan_out), jnp.float32, -bound, bound)
        b = jax.random.uniform(kb, (fan_out,), jnp.float32, -bound, bound)
        return w, b

    def bn_stats(key, n):
        kg, kb, km, kv = jax.random.split(key, 4)
        gamma = 1.0 + 0.1 * jax.random.normal(kg, (n,), jnp.float32)
        beta = 0.1 * jax.random.normal(kb, (n,), jnp.float32)
        mean = 0.1 * jax.random.normal(km, (n,), jnp.float32)
        var = jnp.abs(1.0 + 0.1 * jax.random.normal(kv, (n,), jnp.float32))
        return gamma, beta, mean, var

    def fold(b, gamma, beta, mean, var):
        scale = gamma / jnp.sqrt(var + eps)
        shift = beta + (b - mean) * scale
        return scale.reshape(1, -1), shift.reshape(1, -1)

    k1, k2, k3, k4, k5, k6 = jax.random.split(key, 6)
    w1, b1 = linear(k1, in_features, out_features)
    s1, t1 = fold(b1, *bn_stats(k2, out_features))
    w2, b2 = linear(k3, out_features, out_features)
    s2, t2 = fold(b2, *bn_stats(k4, out_features))
    ws, bs = linear(k5, in_features, out_features)
    ss, ts = fold(bs, *bn_stats(k6, out_features))
    return dict(w1=w1, s1=s1, t1=t1, w2=w2, s2=s2, t2=t2, ws=ws, ss=ss, ts=ts)


def pack_params(p, compute_dtype=jnp.bfloat16):
    """One-time prep: fold BN scales into weight columns, fuse fc1 + shortcut
    weights, fold the shortcut shift into t2, and cast to compute dtypes."""
    w1s = jnp.concatenate([p["w1"] * p["s1"], p["ws"] * p["ss"]],
                          axis=1).astype(compute_dtype)          # (IN, 2*OUT)
    w2 = (p["w2"] * p["s2"]).astype(compute_dtype)               # (OUT, OUT)
    t1 = p["t1"].astype(jnp.float32)                             # (1, OUT)
    t2 = (p["t2"] + p["ts"]).astype(jnp.float32)                 # (1, OUT)
    return dict(w1s=w1s, t1=t1, w2=w2, t2=t2)


def block_change_ref_f32(x, p):
    """Exact f32 eval-mode reference (no folding, no bf16)."""
    h = jnp.maximum(x @ p["w1"] * p["s1"] + p["t1"], 0.0)
    h2 = h @ p["w2"] * p["s2"] + p["t2"]
    sc = x @ p["ws"] * p["ss"] + p["ts"]
    return jnp.maximum(h2 + sc, 0.0)


def block_change_ref_packed(x, packed, out_features):
    """Reference applying the same folding / dtype casts as the kernel."""
    xb = x.astype(packed["w1s"].dtype)
    y = jnp.dot(xb, packed["w1s"], preferred_element_type=jnp.float32)
    h = jnp.maximum(y[:, :out_features] + packed["t1"], 0.0)
    sc = y[:, out_features:]
    h2 = jnp.dot(h.astype(packed["w2"].dtype), packed["w2"],
                 preferred_element_type=jnp.float32) + packed["t2"]
    return jnp.maximum(h2 + sc, 0.0).astype(jnp.bfloat16)


if __name__ == "__main__":
    # TODO(synk): dropout (train-mode) and batch-statistics BatchNorm are not
    # implemented; the kernel reproduces the deterministic inference forward.
    # OUT is a multiple of 128 (lane-dense bf16 output stores); B=512 with
    # tile_b=128 gives 4 grid steps, so each v7x TC still pipelines.
    B, IN, OUT = 512, 64, 128
    key = jax.random.PRNGKey(0)
    kx, kp = jax.random.split(key)
    x = jax.random.normal(kx, (B, IN), jnp.float32)
    params = init_params(kp, IN, OUT)
    packed = pack_params(params)

    out = block_change_pallas(x, packed)
    out = jax.block_until_ready(out)
    assert out.shape == (B, OUT)
    assert out.dtype == jnp.bfloat16
    out_f32 = out.astype(jnp.float32)

    # Tight check against a reference with identical folding / bf16 rounding.
    ref_bf16 = block_change_ref_packed(x, packed, OUT).astype(jnp.float32)
    assert jnp.allclose(out_f32, ref_bf16, atol=1e-2, rtol=1e-2)

    # Loose check against the exact f32 eval-mode forward (bf16 rounding).
    ref_f32 = block_change_ref_f32(x, params)
    assert jnp.allclose(out_f32, ref_f32, atol=5e-2, rtol=5e-2)

    print("KERNEL_OK")
</pallas_src>

<mosaic_0001>
module attributes {stable_mosaic.version = 11 : i64} {
  func.func @block_change_kernel(%arg0: i32, %arg1: memref<128x64xf32, #tpu.memory_space<vmem>>, %arg2: memref<64x256xbf16, #tpu.memory_space<vmem>>, %arg3: memref<1x128xf32, #tpu.memory_space<vmem>>, %arg4: memref<128x128xbf16, #tpu.memory_space<vmem>>, %arg5: memref<1x128xf32, #tpu.memory_space<vmem>>, %arg6: memref<128x128xbf16, #tpu.memory_space<vmem>>) attributes {dimension_semantics = [#tpu.dimension_semantics<parallel>], iteration_bounds = array<i64: 4>, scalar_prefetch = 0 : i64, scratch_operands = 0 : i64, tpu.core_type = #tpu.core_type<tc>, window_params = [{transform_indices = @transform_0, window_bounds = array<i64: 128, 64>}, {pipeline_mode = #tpu.pipeline_mode<synchronous>, transform_indices = @transform_1, window_bounds = array<i64: 64, 256>}, {pipeline_mode = #tpu.pipeline_mode<synchronous>, transform_indices = @transform_2, window_bounds = array<i64: 1, 128>}, {pipeline_mode = #tpu.pipeline_mode<synchronous>, transform_indices = @transform_3, window_bounds = array<i64: 128, 128>}, {pipeline_mode = #tpu.pipeline_mode<synchronous>, transform_indices = @transform_4, window_bounds = array<i64: 1, 128>}, {transform_indices = @transform_5, window_bounds = array<i64: 128, 128>}]} {
    %c0 = arith.constant 0 : index
    %c0_0 = arith.constant 0 : index
    %0 = vector.load %arg1[%c0, %c0_0] : memref<128x64xf32, #tpu.memory_space<vmem>>, vector<128x64xf32>
    %1 = arith.truncf %0 : vector<128x64xf32> to vector<128x64xbf16>
    %c0_1 = arith.constant 0 : index
    %c0_2 = arith.constant 0 : index
    %2 = vector.load %arg2[%c0_1, %c0_2] : memref<64x256xbf16, #tpu.memory_space<vmem>>, vector<64x256xbf16>
    %cst = arith.constant dense<0.000000e+00> : vector<128x256xf32>
    %3 = tpu.matmul %1, %2, %cst {dimension_numbers = #tpu.dot_dimension_numbers<[1], [0], [0], [1], [0, 0, 1, 1], [], []>} : vector<128x64xbf16>, vector<64x256xbf16>, vector<128x256xf32> -> vector<128x256xf32>
    %4 = vector.extract_strided_slice %3 {offsets = [0, 0], sizes = [128, 128], strides = [1, 1]} : vector<128x256xf32> to vector<128x128xf32>
    %c0_3 = arith.constant 0 : index
    %c0_4 = arith.constant 0 : index
    %5 = vector.load %arg3[%c0_3, %c0_4] : memref<1x128xf32, #tpu.memory_space<vmem>>, vector<1x128xf32>
    %6 = vector.broadcast %5 : vector<1x128xf32> to vector<128x128xf32>
    %7 = arith.addf %4, %6 : vector<128x128xf32>
    %cst_5 = arith.constant 0.000000e+00 : f32
    %8 = vector.broadcast %cst_5 : f32 to vector<128x128xf32>
    %9 = arith.maximumf %7, %8 : vector<128x128xf32>
    %10 = vector.extract_strided_slice %3 {offsets = [0, 128], sizes = [128, 128], strides = [1, 1]} : vector<128x256xf32> to vector<128x128xf32>
    %11 = arith.truncf %9 : vector<128x128xf32> to vector<128x128xbf16>
    %c0_6 = arith.constant 0 : index
    %c0_7 = arith.constant 0 : index
    %12 = vector.load %arg4[%c0_6, %c0_7] : memref<128x128xbf16, #tpu.memory_space<vmem>>, vector<128x128xbf16>
    %cst_8 = arith.constant dense<0.000000e+00> : vector<128x128xf32>
    %13 = tpu.matmul %11, %12, %cst_8 {dimension_numbers = #tpu.dot_dimension_numbers<[1], [0], [0], [1], [0, 0, 1, 1], [], []>} : vector<128x128xbf16>, vector<128x128xbf16>, vector<128x128xf32> -> vector<128x128xf32>
    %c0_9 = arith.constant 0 : index
    %c0_10 = arith.constant 0 : index
    %14 = vector.load %arg5[%c0_9, %c0_10] : memref<1x128xf32, #tpu.memory_space<vmem>>, vector<1x128xf32>
    %15 = vector.broadcast %14 : vector<1x128xf32> to vector<128x128xf32>
    %16 = arith.addf %13, %15 : vector<128x128xf32>
    %17 = arith.addf %16, %10 : vector<128x128xf32>
    %cst_11 = arith.constant 0.000000e+00 : f32
    %18 = vector.broadcast %cst_11 : f32 to vector<128x128xf32>
    %19 = arith.maximumf %17, %18 : vector<128x128xf32>
    %20 = arith.truncf %19 : vector<128x128xf32> to vector<128x128xbf16>
    %c0_12 = arith.constant 0 : index
    %c0_13 = arith.constant 0 : index
    %21 = vector.load %arg6[%c0_12, %c0_13] : memref<128x128xbf16, #tpu.memory_space<vmem>>, vector<128x128xbf16>
    tpu.vector_store %arg6[%c0_12, %c0_13], %20 {strides = array<i32>} : memref<128x128xbf16, #tpu.memory_space<vmem>>, vector<128x128xbf16>,
    return
  }
  func.func @transform_0(%arg0: i32) -> (i32, i32) {
    %c0_i32 = arith.constant 0 : i32
    %c0_i32_0 = arith.constant 0 : i32
    return %arg0, %c0_i32 : i32, i32
  }
  func.func @transform_1(%arg0: i32) -> (i32, i32) {
    %c0_i32 = arith.constant 0 : i32
    %c0_i32_0 = arith.constant 0 : i32
    %c0_i32_1 = arith.constant 0 : i32
    return %c0_i32, %c0_i32_0 : i32, i32
  }
  func.func @transform_2(%arg0: i32) -> (i32, i32) {
    %c0_i32 = arith.constant 0 : i32
    %c0_i32_0 = arith.constant 0 : i32
    %c0_i32_1 = arith.constant 0 : i32
    return %c0_i32, %c0_i32_0 : i32, i32
  }
  func.func @transform_3(%arg0: i32) -> (i32, i32) {
    %c0_i32 = arith.constant 0 : i32
    %c0_i32_0 = arith.constant 0 : i32
    %c0_i32_1 = arith.constant 0 : i32
    return %c0_i32, %c0_i32_0 : i32, i32
  }
  func.func @transform_4(%arg0: i32) -> (i32, i32) {
    %c0_i32 = arith.constant 0 : i32
    %c0_i32_0 = arith.constant 0 : i32
    %c0_i32_1 = arith.constant 0 : i32
    return %c0_i32, %c0_i32_0 : i32, i32
  }
  func.func @transform_5(%arg0: i32) -> (i32, i32) {
    %c0_i32 = arith.constant 0 : i32
    %c0_i32_0 = arith.constant 0 : i32
    return %arg0, %c0_i32 : i32, i32
  }
}

</mosaic_0001>

<bundles_post_ra>
// kernel: tpu_custom_call.1
= control target key start
LH: loop header
LB: loop body
LE: loop exit
PB: predicated region body
PF: predicated region fallthrough
CT: control target
= control target key end

     0   :  { %10 = vsyncpa [#allocation3], 0  ;;  %s1449_s0 = inlined_call_operand.vmem [shape: f32[512,64], index: 0, kind: input, shape index: {}]   ;;  %s1450_s1 = inlined_call_operand.vmem [shape: bf16[64,256], index: 1, kind: input, shape index: {}]   ;;  %s1451_s2 = inlined_call_operand.vmem [shape: f32[1,128], index: 2, kind: input, shape index: {}]   ;;  %s1452_s3 = inlined_call_operand.vmem [shape: bf16[128,128], index: 3, kind: input, shape index: {}]   ;;  %s1453_s4 = inlined_call_operand.vmem [shape: f32[1,128], index: 4, kind: input, shape index: {}]   ;;  %s1454_s5 = inlined_call_operand.hbm [shape: bf16[512,128], index: 5, kind: output, shape index: {}]  }
   0x1   :  { %12 = vsyncpa [#allocation3 + $0x1], 0  ;;  %s1164_s18 = smov 0   ;;  %s1166_s19 = smov 0  }
   0x2   :  { %s1168_s20 = smov 0   ;;  %s1170_s21 = smov 0  }
   0x3 LB: > { %s1185_s22 = sadd.s32 4294967295, %s1128_s21   ;;  %s840_s23 = sadd.s32 4294967294, %s1128_s21   ;;  %s1128_s21 = sphi %s1170_s21, %s1460_s21   ;;  %s1124_s20 = sphi %s1168_s20, %s1459_s20   ;;  %s1120_s19 = sphi %s1166_s19, %s1458_s19   ;;  %s1116_s18 = sphi %s1164_s18, %s1457_s18  }
   0x4   : > { %s1189_s24 = sadd.s32 1, %s1128_s21   ;;  %s135_s25 = sadd.s32 1, %s1124_s20 }
   0x5   : > { %s132_s26 = ssub.s32 %s1128_s21, %s1189_s24  ;;  %p145_p0 = scmp.ne.s32.totalorder %s1124_s20, %s1120_s19 }
   0x6   : > { %p133_p1 = scmp.eq.s32.totalorder %s132_s26, 0  ;;  %p146_p2 = scmp.eq.s32.totalorder %s1185_s22, 3 }
   0x7   : > { %p151_p3 = scmp.ne.s32.totalorder %s1120_s19, %s1116_s18  ;;  %p152_p4 = scmp.eq.s32.totalorder %s840_s23, 3 }
   0x8   : > { %s1200_s27 = scalar_select %p133_p1, %s1124_s20, %s135_s25  }
   0x9   : > { %p1202_p5 = por %p146_p2, %p145_p0  ;;  %p1206_p6 = por %p152_p4, %p151_p3 }
   0xa   : > { %p843_p7 = scmp.ge.s32.totalorder %s1128_s21, 1  ;;  %p191_p8 = scmp.lt.s32.totalorder %s1128_s21, 5 }
   0xc   : > { %p192_p9 = pnand %p843_p7, %p191_p8 }
   0xd   : > { %s845_s7 = sshll.u32 (!%p192_p9), %s1185_s22, 4  ;;  %s216_s14 = sand.u32 (!%p192_p9), 1, %s1120_s19  }
   0xe   : > { %195 = sbr.rel (%p192_p9) target bundleno = 516 (0x204), region = 40  ;;  %p220_p10 = scmp.lt.s32.totalorder (!%p192_p9), %s845_s7, 63 }
   0xf   : > { %s844_s15 = sshll.u32 (!%p192_p9), %s216_s14, 6  ;;  %s910_s17 = sshll.u32 (!%p192_p9), %s1185_s22, 10 }
  0x10   : > { %s1401_s30 = scalar_lea.hbm (!%p192_p9), %s1454_s5, %s910_s17  ;;  %s1409_s6 = scalar_lea.sflag (!%p192_p9), [#allocation3], %s216_s14 }
  0x11   : > { %s1131_s8 = smov (!%p192_p9), [#allocation2]  }
  0x12   : > { %s1072_s9 = sshll.u32 (!%p192_p9), %s1131_s8, 4  ;;  %s1073_s9 = int_to_ptr.vmem [resolvable:$false] %s1072_s9 }
  0x13   : > { %v1048_v0 = vld [vmem:[%s1450_s1 + $0x34] ss:$8 sps:$4 sm:$0xff]   ;;  %v1050_v1 = vld [vmem:[%s1450_s1 + $0x30] ss:$8 sps:$4 sm:$0xff]   ;;  %v1130_v2 = vmov 0   ;;  %s1462_s7 = smov (!%p220_p10, %s845_s7), 63 }
  0x14   : > { %356 = vmatprep.mubr.bf16.mxu0 %v1130_v2  ;;  %332 = vmatprep.subr.bf16.mxu0 %v1048_v0  ;;  %v1051_v3 = vld [vmem:[%s1450_s1 + $0x24] ss:$8 sps:$4 sm:$0xff]   ;;  %v1053_v4 = vld [vmem:[%s1450_s1 + $0x20] ss:$8 sps:$4 sm:$0xff]   ;;  %v1054_v5 = vld [vmem:[%s1450_s1 + $0x14] ss:$8 sps:$4 sm:$0xff]  }
  0x15   : > { %333 = vmatpush1.bf16.msra.mxu0 %v1050_v1  ;;  %s846_s16 = sshll.u32 %s1462_s7, 3  ;;  %v1060_v6 = vld [vmem:[%s1452_s3 + $0x38] sm:$0xff]   ;;  %v1057_v8 = vld [vmem:[%s1450_s1 + $0x4] ss:$8 sps:$4 sm:$0xff]   ;;  %v1059_v9 = vld [vmem:[%s1450_s1] ss:$8 sps:$4 sm:$0xff]  }
  0x16   : > { %334 = vmatprep.subr.bf16.mxu0 %v1051_v3  ;;  %v1056_v7 = vld [vmem:[%s1450_s1 + $0x10] ss:$8 sps:$4 sm:$0xff]   ;;  %974 = vmatprep.subr.bf16.mxu1 %v1060_v6  ;;  %s1241_s10 = scalar_lea.vmem %s1449_s0, %s846_s16  ;;  %v1062_v13 = vld [vmem:[%s1452_s3 + $0x28] sm:$0xff]   ;;  %vm299_vm0 = vcmask 523264   ;;  %v1063_v15 = vld [vmem:[%s1452_s3 + $0x20] sm:$0xff]   ;;  %s1365_s16 = scalar_lea.vmem [#allocation2], %s844_s15 }
  0x17   : > { %975 = vmatpush3.bf16.msra.mxu1 %v1060_v6  ;;  %v227_v10 = vld [vmem:[%s1241_s10] sm:$0xff]  ;;  %v228_v11 = vld [vmem:[%s1241_s10 + $0x8] sm:$0xff]  ;;  %v1061_v12 = vld [vmem:[%s1452_s3 + $0x30] sm:$0xff]   ;;  %s778_s23 = sshll.u32 %s1365_s16, 4  ;;  %s1403_s23 = int_to_ptr.vmem [resolvable:$true] %s778_s23 }
  0x18   : > { %v243_v14 = vpack.c.bf16 %v228_v11, %v227_v10  ;;  %976 = vmatprep.subr.bf16.mxu1 %v1061_v12  ;;  %v229_v16 = vld [vmem:[%s1241_s10 + $0x10] sm:$0xff]  ;;  %v230_v17 = vld [vmem:[%s1241_s10 + $0x18] sm:$0xff]  ;;  %v231_v19 = vld [vmem:[%s1241_s10 + $0x20] sm:$0xff]  ;;  %s1068_s22 = scalar_lea.vmem %s1403_s23, 1024  ;;  %p1075_p0 = scmp.lt.s32.totalorder %s1403_s23, %s1073_s9 }
  0x19   : > { %335 = vmatpush1.bf16.msra.mxu0 %v1053_v4  ;;  %v244_v18 = vpack.c.bf16 %v230_v17, %v229_v16  ;;  %v232_v20 = vld [vmem:[%s1241_s10 + $0x28] sm:$0xff]  ;;  %v233_v22 = vld [vmem:[%s1241_s10 + $0x30] sm:$0xff]  ;;  %v234_v23 = vld [vmem:[%s1241_s10 + $0x38] sm:$0xff]  ;;  %p1069_p11 = scmp.ne.s32.totalorder %s1403_s23, %s1068_s22 }
  0x1a   : > { %336 = vmatprep.subr.bf16.mxu0 %v1054_v5  ;;  %v245_v21 = vpack.c.bf16 %v232_v20, %v231_v19  ;;  %v246_v24 = vpack.c.bf16 %v234_v23, %v233_v22  ;;  %v235_v25 = vld [vmem:[%s1241_s10 + $0x40] sm:$0xff]  ;;  %v236_v26 = vld [vmem:[%s1241_s10 + $0x48] sm:$0xff]  ;;  %v237_v28 = vld [vmem:[%s1241_s10 + $0x50] sm:$0xff] }
  0x1b   : > { %977 = vmatpush3.bf16.msra.mxu1 %v1061_v12  ;;  %v247_v27 = vpack.c.bf16 %v236_v26, %v235_v25  ;;  %v238_v29 = vld [vmem:[%s1241_s10 + $0x58] sm:$0xff]  ;;  %v239_v31 = vld [vmem:[%s1241_s10 + $0x60] sm:$0xff]  ;;  %v240_v32 = vld [vmem:[%s1241_s10 + $0x68] sm:$0xff]  ;;  %p1070_p12 = pnand %p1069_p11, %p1202_p5 }
  0x1c   : > { %978 = vmatprep.subr.bf16.mxu1 %v1062_v13  ;;  %v248_v30 = vpack.c.bf16 %v238_v29, %v237_v28  ;;  %v249_v33 = vpack.c.bf16 %v240_v32, %v239_v31  ;;  %v241_v34 = vld [vmem:[%s1241_s10 + $0x70] sm:$0xff]  ;;  %v242_v35 = vld [vmem:[%s1241_s10 + $0x78] sm:$0xff]  ;;  %v1066_v39 = vld [vmem:[%s1452_s3 + $0x8] sm:$0xff]   ;;  %s1074_s10 = scalar_lea.vmem %s1073_s9, 2048 }
  0x1d   : > { %337 = vmatpush1.bf16.msra.mxu0 %v1056_v7  ;;  %v250_v36 = vpack.c.bf16 %v242_v35, %v241_v34  ;;  %v1064_v37 = vld [vmem:[%s1452_s3 + $0x18] sm:$0xff]   ;;  %v1065_v38 = vld [vmem:[%s1452_s3 + $0x10] sm:$0xff]   ;;  %v1067_v40 = vld [vmem:[%s1452_s3] sm:$0xff]   ;;  %p1071_p13 = pneg %p1070_p12  ;;  %p1076_p1 = scmp.lt.s32.totalorder %s1074_s10, %s1068_s22 }
  0x1e   : > { %338 = vmatprep.subr.bf16.mxu0 %v1057_v8  ;;  %v1301_v42 = vld [vmem:[%s1451_s2] ss:$0 sm:$0xff] }
  0x1f   : > { %979 = vmatpush3.bf16.msra.mxu1 %v1062_v13  ;;  %p1077_p2 = por %p1076_p1, %p1075_p0 }
  0x20   : > { %980 = vmatprep.subr.bf16.mxu1 %v1063_v15 }
  0x21   : > { %339 = vmatpush1.bf16.msra.mxu0 %v1059_v9  ;;  %p1078_p3 = pnand %p1077_p2, %p1071_p13 }
  0x23   : > { %981 = vmatpush3.bf16.msra.mxu1 %v1063_v15 }
  0x24   : > { %855 = vmatmul.mubr.msk.bf16.vlgmr.msra.gmra.mxu0 %vm299_vm0, %v243_v14  ;;  %982 = vmatprep.subr.bf16.mxu1 %v1064_v37 }
  0x25   : > { %366 = vmatprep.mubr.bf16.mxu0 %v1130_v2 }
  0x27   : > { %983 = vmatpush3.bf16.msra.mxu1 %v1064_v37 }
  0x28   : > { %984 = vmatprep.subr.bf16.mxu1 %v1065_v38 }
  0x2b   : > { %985 = vmatpush3.bf16.msra.mxu1 %v1065_v38 }
  0x2c   : > { %856 = vmatmul.mubr.msk.bf16.gmra.mxu0 %vm299_vm0, %v244_v18  ;;  %986 = vmatprep.subr.bf16.mxu1 %v1066_v39 }
  0x2d   : > { %376 = vmatprep.mubr.bf16.mxu0 %v1130_v2 }
  0x2f   : > { %987 = vmatpush3.bf16.msra.mxu1 %v1066_v39 }
  0x30   : > { %988 = vmatprep.subr.bf16.mxu1 %v1067_v40 }
  0x33   : > { %989 = vmatpush3.bf16.msra.mxu1 %v1067_v40 }
  0x34   : > { %857 = vmatmul.mubr.msk.bf16.gmra.mxu0 %vm299_vm0, %v245_v21 }
  0x35   : > { %386 = vmatprep.mubr.bf16.mxu0 %v1130_v2 }
  0x3c   : > { %858 = vmatmul.mubr.msk.bf16.gmra.mxu0 %vm299_vm0, %v246_v24 }
  0x3d   : > { %396 = vmatprep.mubr.bf16.mxu0 %v1130_v2 }
  0x44   : > { %859 = vmatmul.mubr.msk.bf16.gmra.mxu0 %vm299_vm0, %v247_v27 }
  0x45   : > { %406 = vmatprep.mubr.bf16.mxu0 %v1130_v2 }
  0x4c   : > { %860 = vmatmul.mubr.msk.bf16.gmra.mxu0 %vm299_vm0, %v248_v30 }
  0x4d   : > { %416 = vmatprep.mubr.bf16.mxu0 %v1130_v2 }
  0x54   : > { %861 = vmatmul.mubr.msk.bf16.gmra.mxu0 %vm299_vm0, %v249_v33 }
  0x55   : > { %426 = vmatprep.mubr.bf16.mxu0 %v1130_v2 }
  0x5c   : > { %862 = vmatmul.mubr.msk.bf16.gmra.mxu0 %vm299_vm0, %v250_v36 }
  0xe4   : > { %v358_v41 = vpop.f32.mrf.mxu0 }
  0xe5   : > { %v444_v44 = vadd.f32 %v1301_v42, %v358_v41 }
  0xe6   : > { %v1303_v43 = vpop.f32.mrf.mxu0 }
  0xe7   : > { %v460_v48 = vmax.f32 %v444_v44, 0.0 }
  0xe8   : > { %v362_v45 = vpop.f32.mrf.mxu0 }
  0xe9   : > { %v445_v46 = vadd.f32 %v1301_v42, %v362_v45 }
  0xea   : > { %v1307_v47 = vpop.f32.mrf.mxu0 }
  0xeb   : > { %v461_v49 = vmax.f32 %v445_v46, 0.0 }
  0xec   : > { %v368_v50 = vpop.f32.mrf.mxu0 }
  0xed   : > { %v476_v51 = vpack.c.bf16 %v461_v49, %v460_v48  ;;  %v446_v53 = vadd.f32 %v1301_v42, %v368_v50 }
  0xee   : > { %v1309_v52 = vpop.f32.mrf.mxu0 }
  0xef   : > { %990 = vmatprep.mubr.bf16.mxu1 %v476_v51  ;;  %v462_v57 = vmax.f32 %v446_v53, 0.0  ;;  %v1352_v53 = vld [vmem:[%s1453_s4] ss:$0 sm:$0xff] }
  0xf0   : > { %v372_v54 = vpop.f32.mrf.mxu0 }
  0xf1   : > { %v447_v55 = vadd.f32 %v1301_v42, %v372_v54 }
  0xf2   : > { %v1313_v56 = vpop.f32.mrf.mxu0 }
  0xf3   : > { %v463_v58 = vmax.f32 %v447_v55, 0.0 }
  0xf4   : > { %v378_v59 = vpop.f32.mrf.mxu0 }
  0xf5   : > { %v477_v60 = vpack.c.bf16 %v463_v58, %v462_v57  ;;  %v448_v62 = vadd.f32 %v1301_v42, %v378_v59 }
  0xf6   : > { %v1315_v61 = vpop.f32.mrf.mxu0 }
  0xf7   : > { %991 = vmatmul.mubr.bf16.vlgmr.msra.gmra.mxu1 %v477_v60  ;;  %v464_v2 = vmax.f32 %v448_v62, 0.0 }
  0xf8   : > { %v382_v63 = vpop.f32.mrf.mxu0 }
  0xf9   : > { %v449_v0 = vadd.f32 %v1301_v42, %v382_v63 }
  0xfa   : > { %v1319_v1 = vpop.f32.mrf.mxu0 }
  0xfb   : > { %v465_v3 = vmax.f32 %v449_v0, 0.0 }
  0xfc   : > { %v388_v4 = vpop.f32.mrf.mxu0 }
  0xfd   : > { %v478_v5 = vpack.c.bf16 %v465_v3, %v464_v2  ;;  %v450_v7 = vadd.f32 %v1301_v42, %v388_v4 }
  0xfe   : > { %v1321_v6 = vpop.f32.mrf.mxu0 }
  0xff   : > { %994 = vmatprep.mubr.bf16.mxu1 %v478_v5  ;;  %v466_v11 = vmax.f32 %v450_v7, 0.0 }
 0x100   : > { %v392_v8 = vpop.f32.mrf.mxu0 }
 0x101   : > { %v451_v9 = vadd.f32 %v1301_v42, %v392_v8 }
 0x102   : > { %v1325_v10 = vpop.f32.mrf.mxu0 }
 0x103   : > { %v467_v12 = vmax.f32 %v451_v9, 0.0 }
 0x104   : > { %v398_v13 = vpop.f32.mrf.mxu0 }
 0x105   : > { %v479_v14 = vpack.c.bf16 %v467_v12, %v466_v11  ;;  %v452_v16 = vadd.f32 %v1301_v42, %v398_v13 }
 0x106   : > { %v1327_v15 = vpop.f32.mrf.mxu0 }
 0x107   : > { %995 = vmatmul.mubr.bf16.gmra.mxu1 %v479_v14  ;;  %v468_v20 = vmax.f32 %v452_v16, 0.0 }
 0x108   : > { %v402_v17 = vpop.f32.mrf.mxu0 }
 0x109   : > { %v453_v18 = vadd.f32 %v1301_v42, %v402_v17 }
 0x10a   : > { %v1331_v19 = vpop.f32.mrf.mxu0 }
 0x10b   : > { %v469_v21 = vmax.f32 %v453_v18, 0.0 }
 0x10c   : > { %v408_v22 = vpop.f32.mrf.mxu0 }
 0x10d   : > { %v480_v23 = vpack.c.bf16 %v469_v21, %v468_v20  ;;  %v454_v25 = vadd.f32 %v1301_v42, %v408_v22 }
 0x10e   : > { %v1333_v24 = vpop.f32.mrf.mxu0 }
 0x10f   : > { %998 = vmatprep.mubr.bf16.mxu1 %v480_v23  ;;  %v470_v29 = vmax.f32 %v454_v25, 0.0 }
 0x110   : > { %v412_v26 = vpop.f32.mrf.mxu0 }
 0x111   : > { %v455_v27 = vadd.f32 %v1301_v42, %v412_v26 }
 0x112   : > { %v1337_v28 = vpop.f32.mrf.mxu0 }
 0x113   : > { %v471_v30 = vmax.f32 %v455_v27, 0.0 }
 0x114   : > { %v418_v31 = vpop.f32.mrf.mxu0 }
 0x115   : > { %v481_v32 = vpack.c.bf16 %v471_v30, %v470_v29  ;;  %v456_v34 = vadd.f32 %v1301_v42, %v418_v31 }
 0x116   : > { %v1339_v33 = vpop.f32.mrf.mxu0 }
 0x117   : > { %999 = vmatmul.mubr.bf16.gmra.mxu1 %v481_v32  ;;  %v472_v38 = vmax.f32 %v456_v34, 0.0 }
 0x118   : > { %v422_v35 = vpop.f32.mrf.mxu0 }
 0x119   : > { %v457_v36 = vadd.f32 %v1301_v42, %v422_v35 }
 0x11a   : > { %v1343_v37 = vpop.f32.mrf.mxu0 }
 0x11b   : > { %v473_v39 = vmax.f32 %v457_v36, 0.0 }
 0x11c   : > { %v428_v40 = vpop.f32.mrf.mxu0 }
 0x11d   : > { %v482_v41 = vpack.c.bf16 %v473_v39, %v472_v38  ;;  %v458_v45 = vadd.f32 %v1301_v42, %v428_v40 }
 0x11e   : > { %v1345_v44 = vpop.f32.mrf.mxu0 }
 0x11f   : > { %1002 = vmatprep.mubr.bf16.mxu1 %v482_v41  ;;  %v474_v49 = vmax.f32 %v458_v45, 0.0 }
 0x120   : > { %v432_v46 = vpop.f32.mrf.mxu0 }
 0x121   : > { %v459_v48 = vadd.f32 %v1301_v42, %v432_v46 }
 0x123   : > { %v475_v50 = vmax.f32 %v459_v48, 0.0 }
 0x125   : > { %v483_v51 = vpack.c.bf16 %v475_v50, %v474_v49 }
 0x127   : > { %1003 = vmatmul.mubr.bf16.gmra.mxu1 %v483_v51 }
 0x1b7   : > { %v992_v54 = vpop.f32.mrf.mxu1 }
 0x1b8   : > { %v598_v55 = vadd.f32 %v992_v54, %v1352_v53 }
 0x1b9   : > { %v589_v57 = vpop.f32.mrf.mxu1 }
 0x1ba   : > { %v590_v58 = vadd.f32 %v1352_v53, %v589_v57  ;;  %v654_v42 = vadd.f32 %v598_v55, %v1309_v52 }
 0x1bb   : > { %v993_v59 = vpop.f32.mrf.mxu1 }
 0x1bc   : > { %v601_v60 = vadd.f32 %v993_v59, %v1352_v53  ;;  %v652_v63 = vadd.f32 %v590_v58, %v1303_v43  ;;  %v670_v3 = vmax.f32 %v654_v42, 0.0 }
 0x1bd   : > { %v592_v62 = vpop.f32.mrf.mxu1 }
 0x1be   : > { %v655_v0 = vadd.f32 %v601_v60, %v1313_v56  ;;  %v593_v2 = vadd.f32 %v1352_v53, %v592_v62  ;;  %v668_v7 = vmax.f32 %v652_v63, 0.0 }
 0x1c0   : > { %v671_v4 = vmax.f32 %v655_v0, 0.0  ;;  %v653_v5 = vadd.f32 %v593_v2, %v1307_v47 }
 0x1c2   : > { %v919_v8 = vpack.c.bf16 %v671_v4, %v670_v3  ;;  %v669_v9 = vmax.f32 %v653_v5, 0.0 }
 0x1c4   : > { %951 = vst [vmem:[%s1365_s16 + $0x8] sm:$0xff] %v919_v8   ;;  %v914_v52 = vpack.c.bf16 %v669_v9, %v668_v7 }
 0x1c6   : > { %915 = vst [vmem:[%s1365_s16] sm:$0xff] %v914_v52  }
 0x1c7   : > { %v996_v43 = vpop.f32.mrf.mxu1 }
 0x1c8   : > { %v614_v11 = vadd.f32 %v996_v43, %v1352_v53 }
 0x1c9   : > { %v605_v56 = vpop.f32.mrf.mxu1 }
 0x1ca   : > { %v606_v12 = vadd.f32 %v1352_v53, %v605_v56  ;;  %v658_v47 = vadd.f32 %v614_v11, %v1321_v6 }
 0x1cb   : > { %v997_v13 = vpop.f32.mrf.mxu1 }
 0x1cc   : > { %v617_v14 = vadd.f32 %v997_v13, %v1352_v53  ;;  %v656_v17 = vadd.f32 %v606_v12, %v1315_v61  ;;  %v674_v21 = vmax.f32 %v658_v47, 0.0 }
 0x1cd   : > { %v608_v16 = vpop.f32.mrf.mxu1 }
 0x1ce   : > { %v659_v18 = vadd.f32 %v617_v14, %v1325_v10  ;;  %v609_v20 = vadd.f32 %v1352_v53, %v608_v16  ;;  %v672_v25 = vmax.f32 %v656_v17, 0.0 }
 0x1d0   : > { %v675_v22 = vmax.f32 %v659_v18, 0.0  ;;  %v657_v23 = vadd.f32 %v609_v20, %v1319_v1 }
 0x1d2   : > { %v929_v26 = vpack.c.bf16 %v675_v22, %v674_v21  ;;  %v673_v27 = vmax.f32 %v657_v23, 0.0 }
 0x1d4   : > { %953 = vst [vmem:[%s1365_s16 + $0x18] sm:$0xff] %v929_v26   ;;  %v924_v29 = vpack.c.bf16 %v673_v27, %v672_v25 }
 0x1d6   : > { %952 = vst [vmem:[%s1365_s16 + $0x10] sm:$0xff] %v924_v29  }
 0x1d7   : > { %v1000_v6 = vpop.f32.mrf.mxu1 }
 0x1d8   : > { %v630_v30 = vadd.f32 %v1000_v6, %v1352_v53 }
 0x1d9   : > { %v621_v31 = vpop.f32.mrf.mxu1 }
 0x1da   : > { %v622_v61 = vadd.f32 %v1352_v53, %v621_v31  ;;  %v662_v32 = vadd.f32 %v630_v30, %v1333_v24 }
 0x1db   : > { %v1001_v10 = vpop.f32.mrf.mxu1 }
 0x1dc   : > { %v633_v34 = vadd.f32 %v1001_v10, %v1352_v53  ;;  %v660_v35 = vadd.f32 %v622_v61, %v1327_v15  ;;  %v678_v39 = vmax.f32 %v662_v32, 0.0 }
 0x1dd   : > { %v624_v1 = vpop.f32.mrf.mxu1 }
 0x1de   : > { %v663_v36 = vadd.f32 %v633_v34, %v1337_v28  ;;  %v625_v38 = vadd.f32 %v1352_v53, %v624_v1  ;;  %v676_v45 = vmax.f32 %v660_v35, 0.0 }
 0x1e0   : > { %v679_v40 = vmax.f32 %v663_v36, 0.0  ;;  %v661_v41 = vadd.f32 %v625_v38, %v1331_v19  ;;  %v434_v19 = vpop.f32.mrf.mxu0 }
 0x1e2   : > { %v939_v46 = vpack.c.bf16 %v679_v40, %v678_v39  ;;  %v677_v48 = vmax.f32 %v661_v41, 0.0 }
 0x1e4   : > { %955 = vst [vmem:[%s1365_s16 + $0x28] sm:$0xff] %v939_v46   ;;  %v934_v49 = vpack.c.bf16 %v677_v48, %v676_v45 }
 0x1e6   : > { %954 = vst [vmem:[%s1365_s16 + $0x20] sm:$0xff] %v934_v49  }
 0x1e7   : > { %v1004_v24 = vpop.f32.mrf.mxu1 }
 0x1e8   : > { %v646_v50 = vadd.f32 %v1004_v24, %v1352_v53 }
 0x1e9   : > { %v637_v15 = vpop.f32.mrf.mxu1 }
 0x1ea   : > { %v638_v28 = vadd.f32 %v1352_v53, %v637_v15  ;;  %v666_v54 = vadd.f32 %v646_v50, %v1345_v44 }
 0x1eb   : > { %v1005_v51 = vpop.f32.mrf.mxu1 }
 0x1ec   : > { %v649_v55 = vadd.f32 %v1005_v51, %v1352_v53  ;;  %v664_v58 = vadd.f32 %v638_v28, %v1339_v33  ;;  %v682_v60 = vmax.f32 %v666_v54, 0.0 }
 0x1ed   : > { %v640_v57 = vpop.f32.mrf.mxu1 }
 0x1ee   : > { %v667_v59 = vadd.f32 %v649_v55, %v434_v19  ;;  %v641_v42 = vadd.f32 %v1352_v53, %v640_v57  ;;  %v680_v44 = vmax.f32 %v664_v58, 0.0 }
 0x1f0   : > { %v683_v62 = vmax.f32 %v667_v59, 0.0  ;;  %v665_v63 = vadd.f32 %v641_v42, %v1343_v37 }
 0x1f2   : > { %v949_v0 = vpack.c.bf16 %v683_v62, %v682_v60  ;;  %v681_v2 = vmax.f32 %v665_v63, 0.0 }
 0x1f4   : > { %957 = vst [vmem:[%s1365_s16 + $0x38] sm:$0xff] %v949_v0   ;;  %v944_v33 = vpack.c.bf16 %v681_v2, %v680_v44 }
 0x1f6   : > { %956 = vst [vmem:[%s1365_s16 + $0x30] sm:$0xff] %v944_v33  }
 0x1f7   : > { %1081 = shalt.err (!%p1078_p3)
}
 0x1f8   : > { %s1082_s7 = scalar_lea.hbm %s1401_s30, 1024  ;;  %s1086_s13 = scalar_lea.hbm %s1454_s5, 4096 }
 0x1f9   : > { %p1083_p4 = scmp.ne.s32.totalorder %s1401_s30, %s1082_s7  ;;  %p1087_p9 = scmp.lt.s32.totalorder %s1401_s30, %s1454_s5 }
 0x1fa   : > { %p1088_p10 = scmp.lt.s32.totalorder %s1086_s13, %s1082_s7 }
 0x1fb   : > { %p1084_p7 = pnand %p1083_p4, %p1202_p5 }
 0x1fc   : > { %p1089_p11 = por %p1088_p10, %p1087_p9 }
 0x1fd   : > { %p1085_p8 = pneg %p1084_p7 }
 0x1ff   : > { %p1090_p12 = pnand %p1089_p11, %p1085_p8 }
 0x201   : > { %1093 = shalt.err (!%p1090_p12)
}
 0x202   : > { %s1132_s16 = smov 64   ;;  %s1133_s17 = smov 4  }
 0x203   : > { %1006 = dma.vmem_to_hbm [thread:$0]  (%p1202_p5), %s1403_s23, 1024, %s1401_s30, %s1409_s6, %s1132_s16, %s1132_s16, %s1133_s17  }
 0x204 PF: > { %p1012_p13 = scmp.ge.s32.totalorder %s1128_s21, 2  ;;  %s793_s25 = sand.u32 1, %s1116_s18  }
 0x205   : > { %s794_s26 = scalar_lea.sflag [#allocation3], %s793_s25 }
 0x206   : > { %p1009_p0 = pnand %p1012_p13, %p1206_p6 }
 0x208   : > { %p1010_p1 = pneg %p1009_p0 }
 0x20a   : > { %1111 = dma.done.wait (%p1010_p1), %s794_s26, 1024  }
 0x20b   : > { %1113 = vsyncadd (%p1010_p1), %s794_s26, 4294966272  ;;  %p15_p2 = scmp.ge.s32.totalorder %s1189_s24, 6   ;;  %s1457_s18 = smov %s1120_s19 }
 0x20c   : > { %s1458_s19 = smov %s1124_s20  ;;  %s1459_s20 = smov %s1200_s27 }
 0x20d   : > { %s1460_s21 = smov %s1189_s24  ;;  %17 = sbr.rel (!%p15_p2) target bundleno = 3 (0x3), region = 75 }
 0x212   :  { %799 = vsyncpa [#allocation3], 1 }
 0x213   :  { %801 = vsyncpa [#allocation3 + $0x1], 1 }

</bundles_post_ra>
